<compile_context>
chip_gen: v7x
topology: tpu7x:2x2x1
jax: 0.10.0
libtpu: 0.0.40
codegen_flags: <defaults>
</compile_context>

<pallas_src>
import functools

import jax
import jax.numpy as jnp
from jax.experimental import pallas as pl
from jax.experimental.pallas import tpu as pltpu


# ------------------------------- helpers ----------------------------------- #
def _round_up(x, m):
    return ((x + m - 1) // m) * m


def _choose_tile_rows(n, d, itemsize, block_bytes):
    """Rows per grad tile.

    Sized from a VMEM byte budget for ONE grad buffer, counting the padded
    lane dim (a (rows, d) tile occupies rows * round_up(d, 128) * itemsize of
    VMEM), so small-D problems cannot blow VMEM.  Kept a multiple of 128 so
    the (1, tile_rows) weight block stays lane-aligned, and clamped to the
    128-rounded problem size so tiny batches use a single small tile.
    """
    d_vmem = _round_up(max(int(d), 1), 128)
    t = max(int(block_bytes) // (d_vmem * int(itemsize)), 128)
    t = (t // 128) * 128
    t = min(t, _round_up(max(int(n), 1), 128))
    return max(t, 128)


# ----------------------------- Pallas kernel ------------------------------- #
def _wgrad_sq_kernel(w_ref, grad_ref, out_ref, *, n_rows, tile_rows, ragged):
    """out[1, D] += w[1, T] @ (grad * grad)[T, D]   (MXU accumulation, f32).

    Row 0 of the accumulator ends up holding sum_n w_n * grad_{n,d}^2.
    Tail rows of a ragged final tile are zeroed (uninitialized VMEM pad may
    contain NaN/Inf and would poison the MXU accumulator otherwise).
    """
    step = pl.program_id(0)

    @pl.when(step == 0)
    def _():
        out_ref[...] = jnp.zeros_like(out_ref)

    g = grad_ref[...].astype(jnp.float32)          # square/accumulate in f32
    if ragged:                                     # static: emitted only if needed
        rows = jax.lax.broadcasted_iota(jnp.int32, g.shape, 0) + step * tile_rows
        g = jnp.where(rows < n_rows, g, 0.0)
    out_ref[...] += jnp.dot(w_ref[...], g * g, preferred_element_type=jnp.float32)


# ------------------------------- wrapper ------------------------------------ #
def committor_loss_pallas(grad, q, labels, w, mass, *, alpha, gamma=10000.0,
                          delta_f=0.0, cell=None,
                          block_bytes=4 * 1024 * 1024):
    """grad: (N, D) = dq/dx, q: (N, 1) or (N,), labels: (N,), w: (N,), mass: (D,).

    Returns (loss, gamma*loss_var, alpha*gamma*loss_A, alpha*gamma*loss_B).
    `delta_f` and `cell` must be static Python scalars.
    """
    n, d = grad.shape
    labels = labels.reshape(-1).astype(jnp.float32)
    q = q.reshape(-1).astype(jnp.float32)
    w = w.reshape(-1).astype(jnp.float32)

    mask_A = labels == 0.0
    mask_B = labels == 1.0

    # delta_f re-weighting (tiny O(N) op, plain JAX; mirrors torch in-place update)
    if delta_f < 0.0:
        w = jnp.where(mask_B, w * jnp.exp(jnp.float32(delta_f)), w)
    elif delta_f > 0.0:
        w = jnp.where(mask_A, w * jnp.exp(jnp.float32(delta_f)), w)

    # Fold cubic-cell scaling into inv_mass: (grad/cell)^2 / m == grad^2 / (m*cell^2)
    inv_mass = 1.0 / mass.reshape(-1).astype(jnp.float32)
    if cell is not None:
        inv_mass = inv_mass / (jnp.float32(cell) ** 2)

    # -------- tiling of the heavy (N, D) reduction (no grad copy/pad) --------
    itemsize = jnp.dtype(grad.dtype).itemsize
    tile_rows = _choose_tile_rows(n, d, itemsize, block_bytes)
    num_tiles = pl.cdiv(n, tile_rows)
    n_pad = num_tiles * tile_rows
    ragged = (n % tile_rows) != 0

    # Weights as one contiguous lane-dense (1, N_pad) row; tail lanes are real zeros.
    w_row = jnp.zeros((1, n_pad), jnp.float32).at[0, :n].set(w)

    cost = pl.CostEstimate(
        flops=3 * n * d,                 # square + (1,T)@(T,D) dot
        transcendentals=0,
        bytes_accessed=n * d * itemsize + n_pad * 4 + d * 4,
    )

    kernel = functools.partial(_wgrad_sq_kernel, n_rows=n,
                               tile_rows=tile_rows, ragged=ragged)

    acc = pl.pallas_call(
        kernel,
        out_shape=jax.ShapeDtypeStruct((1, d), jnp.float32),
        grid=(num_tiles,),
        in_specs=[
            pl.BlockSpec((1, tile_rows), lambda i: (0, i)),
            pl.BlockSpec((tile_rows, d), lambda i: (i, 0)),
        ],
        out_specs=pl.BlockSpec((1, d), lambda i: (0, 0)),
        compiler_params=pltpu.CompilerParams(
            dimension_semantics=("arbitrary",),
            vmem_limit_bytes=40 * 1024 * 1024,   # safe within v7x's 64 MiB physical
        ),
        cost_estimate=cost,
    )(w_row, grad)

    loss_var = jnp.sum(acc[0] * inv_mass) / jnp.float32(n)

    # boundary terms (O(N), lane-sparse -> plain JAX). Counts clamped to >= 1
    # (torch reference would NaN on an empty basin).
    mA = mask_A.astype(jnp.float32)
    mB = mask_B.astype(jnp.float32)
    cnt_A = jnp.maximum(jnp.sum(mA), 1.0)
    cnt_B = jnp.maximum(jnp.sum(mB), 1.0)
    loss_A = jnp.sum(mA * q * q) / cnt_A
    loss_B = jnp.sum(mB * (q - 1.0) * (q - 1.0)) / cnt_B

    gamma_f = jnp.float32(gamma)
    alpha_f = jnp.float32(alpha)
    loss = gamma_f * (loss_var + alpha_f * (loss_A + loss_B))
    return loss, gamma_f * loss_var, alpha_f * gamma_f * loss_A, alpha_f * gamma_f * loss_B


# ------------------------------ plain-JAX ref ------------------------------- #
def committor_loss_ref(grad, q, labels, w, mass, *, alpha, gamma, delta_f, cell):
    labels = labels.reshape(-1)
    mask_A = labels == 0.0
    mask_B = labels == 1.0
    if delta_f < 0.0:
        w = jnp.where(mask_B, w * jnp.exp(delta_f), w)
    elif delta_f > 0.0:
        w = jnp.where(mask_A, w * jnp.exp(delta_f), w)
    if cell is not None:
        grad = grad / cell
    grad_square = jnp.sum(grad ** 2 * (1.0 / mass[None, :]), axis=1,
                          keepdims=True) * w[:, None]
    loss_var = jnp.mean(grad_square)
    qf = q.reshape(-1)
    loss_A = jnp.sum(jnp.where(mask_A, qf ** 2, 0.0)) / jnp.sum(mask_A)
    loss_B = jnp.sum(jnp.where(mask_B, (qf - 1.0) ** 2, 0.0)) / jnp.sum(mask_B)
    loss = gamma * (loss_var + alpha * (loss_A + loss_B))
    return loss, gamma * loss_var, alpha * gamma * loss_A, alpha * gamma * loss_B


# ---------------------------------- main ------------------------------------ #
if __name__ == "__main__":
    key = jax.random.PRNGKey(0)
    k_x, k_W, k_b, k_rw = jax.random.split(key, 4)

    N = 300          # batch of configurations
    n_atoms = 4
    D = n_atoms * 3  # 12 coordinates per configuration

    x = jax.random.normal(k_x, (N, D), dtype=jnp.float32)
    labels = (jnp.arange(N) >= N // 2).astype(jnp.float32)   # 0 = A, 1 = B
    w = jax.random.uniform(k_rw, (N,), dtype=jnp.float32, minval=0.5, maxval=1.5)

    atom_masses = jnp.array([12.011, 1.008, 15.999, 14.007], dtype=jnp.float32)
    mass = jnp.repeat(atom_masses, 3)   # (D,)

    # deterministic synthetic "NN" committor guess: q(x) = sigmoid(x @ W + b)
    W = jax.random.normal(k_W, (D, 1), dtype=jnp.float32) * 0.3
    b = jax.random.normal(k_b, (1,), dtype=jnp.float32) * 0.1

    def nn_q(xx):
        return jax.nn.sigmoid(xx @ W + b)   # (N, 1)

    # TODO(synk): torch.autograd.grad(q, x, grad_outputs=1) has no in-kernel
    # equivalent; q and dq/dx are produced with jax.vjp as glue.
    q, vjp_fn = jax.vjp(nn_q, x)
    (grad,) = vjp_fn(jnp.ones_like(q))      # (N, D)

    alpha, gamma, delta_f, cell = 0.1, 10000.0, 0.5, 1.5

    refs = committor_loss_ref(grad, q, labels, w, mass,
                              alpha=alpha, gamma=gamma,
                              delta_f=delta_f, cell=cell)

    # 1) default tiling: one large (ragged) tile
    outs = committor_loss_pallas(grad, q, labels, w, mass,
                                 alpha=alpha, gamma=gamma,
                                 delta_f=delta_f, cell=cell)
    outs = jax.block_until_ready(outs)
    for o, r in zip(outs, refs):
        assert jnp.allclose(o, r, rtol=1e-4, atol=1e-4), (o, r)

    # 2) forced small tiles: exercises multi-step accumulation + ragged tail mask
    outs_small = committor_loss_pallas(grad, q, labels, w, mass,
                                       alpha=alpha, gamma=gamma,
                                       delta_f=delta_f, cell=cell,
                                       block_bytes=128 * 128 * 4)
    outs_small = jax.block_until_ready(outs_small)
    for o, r in zip(outs_small, refs):
        assert jnp.allclose(o, r, rtol=1e-4, atol=1e-4), (o, r)

    print("KERNEL_OK")
</pallas_src>

<mosaic_0001>
module attributes {stable_mosaic.version = 11 : i64} {
  func.func @_wgrad_sq_kernel(%arg0: i32, %arg1: memref<1x384xf32, #tpu.memory_space<vmem>>, %arg2: memref<384x12xf32, #tpu.memory_space<vmem>>, %arg3: memref<1x12xf32, #tpu.memory_space<vmem>>) attributes {dimension_semantics = [#tpu.dimension_semantics<arbitrary>], iteration_bounds = array<i64: 1>, scalar_prefetch = 0 : i64, scratch_operands = 0 : i64, tpu.core_type = #tpu.core_type<tc>, window_params = [{transform_indices = @transform_0, window_bounds = array<i64: 1, 384>}, {transform_indices = @transform_1, window_bounds = array<i64: 384, 12>}, {pipeline_mode = #tpu.pipeline_mode<synchronous>, transform_indices = @transform_2, window_bounds = array<i64: 1, 12>}]} {
    %c0_i32 = arith.constant 0 : i32
    %0 = arith.cmpi eq, %arg0, %c0_i32 : i32
    %1 = arith.extui %0 : i1 to i32
    %c0_i32_0 = arith.constant 0 : i32
    %2 = arith.cmpi ne, %1, %c0_i32_0 : i32
    scf.if %2 {
      %cst_9 = arith.constant 0.000000e+00 : f32
      %18 = vector.broadcast %cst_9 : f32 to vector<1x12xf32>
      %c0_10 = arith.constant 0 : index
      %c0_11 = arith.constant 0 : index
      %19 = vector.load %arg3[%c0_10, %c0_11] : memref<1x12xf32, #tpu.memory_space<vmem>>, vector<1x12xf32>
      tpu.vector_store %arg3[%c0_10, %c0_11], %18 {strides = array<i32>} : memref<1x12xf32, #tpu.memory_space<vmem>>, vector<1x12xf32>,
    } else {
    }
    %c0 = arith.constant 0 : index
    %c0_1 = arith.constant 0 : index
    %3 = vector.load %arg2[%c0, %c0_1] : memref<384x12xf32, #tpu.memory_space<vmem>>, vector<384x12xf32>
    %4 = tpu.iota {dimensions = array<i32: 0>} : vector<384x12xi32>
    %c384_i32 = arith.constant 384 : i32
    %5 = arith.muli %arg0, %c384_i32 : i32
    %6 = vector.broadcast %5 : i32 to vector<384x12xi32>
    %7 = arith.addi %4, %6 : vector<384x12xi32>
    %c300_i32 = arith.constant 300 : i32
    %8 = vector.broadcast %c300_i32 : i32 to vector<384x12xi32>
    %9 = arith.cmpi slt, %7, %8 : vector<384x12xi32>
    %cst = arith.constant 0.000000e+00 : f32
    %10 = vector.broadcast %cst : f32 to vector<384x12xf32>
    %11 = arith.select %9, %3, %10 : vector<384x12xi1>, vector<384x12xf32>
    %c0_2 = arith.constant 0 : index
    %c0_3 = arith.constant 0 : index
    %12 = vector.load %arg3[%c0_2, %c0_3] : memref<1x12xf32, #tpu.memory_space<vmem>>, vector<1x12xf32>
    %c0_4 = arith.constant 0 : index
    %c0_5 = arith.constant 0 : index
    %13 = vector.load %arg1[%c0_4, %c0_5] : memref<1x384xf32, #tpu.memory_space<vmem>>, vector<1x384xf32>
    %14 = arith.mulf %11, %11 : vector<384x12xf32>
    %cst_6 = arith.constant dense<0.000000e+00> : vector<1x12xf32>
    %15 = tpu.matmul %13, %14, %cst_6 {dimension_numbers = #tpu.dot_dimension_numbers<[1], [0], [0], [1], [0, 0, 1, 1], [], []>} : vector<1x384xf32>, vector<384x12xf32>, vector<1x12xf32> -> vector<1x12xf32>
    %16 = arith.addf %12, %15 : vector<1x12xf32>
    %c0_7 = arith.constant 0 : index
    %c0_8 = arith.constant 0 : index
    %17 = vector.load %arg3[%c0_7, %c0_8] : memref<1x12xf32, #tpu.memory_space<vmem>>, vector<1x12xf32>
    tpu.vector_store %arg3[%c0_7, %c0_8], %16 {strides = array<i32>} : memref<1x12xf32, #tpu.memory_space<vmem>>, vector<1x12xf32>,
    return
  }
  func.func @transform_0(%arg0: i32) -> (i32, i32) {
    %c0_i32 = arith.constant 0 : i32
    %c0_i32_0 = arith.constant 0 : i32
    return %c0_i32, %arg0 : i32, i32
  }
  func.func @transform_1(%arg0: i32) -> (i32, i32) {
    %c0_i32 = arith.constant 0 : i32
    %c0_i32_0 = arith.constant 0 : i32
    return %arg0, %c0_i32 : i32, i32
  }
  func.func @transform_2(%arg0: i32) -> (i32, i32) {
    %c0_i32 = arith.constant 0 : i32
    %c0_i32_0 = arith.constant 0 : i32
    %c0_i32_1 = arith.constant 0 : i32
    return %c0_i32, %c0_i32_0 : i32, i32
  }
}

</mosaic_0001>

<bundles_post_ra>
// kernel: tpu_custom_call.1
= control target key start
LH: loop header
LB: loop body
LE: loop exit
PB: predicated region body
PF: predicated region fallthrough
CT: control target
= control target key end

     0   :  { %vm16_vm0 = vcmask 90112   ;;  %v610_v9 = vmov 0.0|0.0   ;;  %v611_v10 = vmov 0.0   ;;  %vm612_vm1 = vmmov 0   ;;  %s774_s0 = inlined_call_operand.vmem [shape: f32[1,384], index: 0, kind: input, shape index: {}]   ;;  %s775_s1 = inlined_call_operand.vmem [shape: f32[300,12], index: 1, kind: input, shape index: {}]   ;;  %s776_s2 = inlined_call_operand.hbm [shape: f32[1,12], index: 2, kind: output, shape index: {}]  }
   0x1   :  { %v34_v0 = vld [vmem:[%s775_s1 + $0x80] sm:$0xff]  ;;  %v35_v1 = vld [vmem:[%s775_s1 + $0x88] sm:$0xff]  ;;  %v36_v7 = vld [vmem:[%s775_s1 + $0x90] sm:$0xff]  ;;  %573 = vmatprep.subr.bf16.mxu1 %v610_v9  ;;  %17 = vst.msk [vmem:[#allocation2] sm:$0x1] %vm16_vm0, %v611_v10  ;;  %538 = vmatprep.mubr.msk.f32.mxu1 %vm612_vm1, %v611_v10  ;;  %v66_v34 = vlaneseq }
   0x2   :  { %v18_v2 = vld [vmem:[%s775_s1] sm:$0xff]  ;;  %v279_v3 = vmul.f32 %v34_v0, %v34_v0  ;;  %v280_v4 = vmul.f32 %v35_v1, %v35_v1  ;;  %v19_v5 = vld [vmem:[%s775_s1 + $0x8] sm:$0xff]  ;;  %v37_v8 = vld [vmem:[%s775_s1 + $0x98] sm:$0xff]  ;;  %v281_v12 = vmul.f32 %v36_v7, %v36_v7 }
   0x3   :  { %v263_v6 = vmul.f32 %v18_v2, %v18_v2  ;;  %v264_v11 = vmul.f32 %v19_v5, %v19_v5  ;;  %v282_v13 = vmul.f32 %v37_v8, %v37_v8  ;;  %v20_v14 = vld [vmem:[%s775_s1 + $0x10] sm:$0xff]  ;;  %v21_v15 = vld [vmem:[%s775_s1 + $0x18] sm:$0xff]  ;;  %v38_v16 = vld [vmem:[%s775_s1 + $0xa0] sm:$0xff]  ;;  %v700_v50 = vshrl.u32 %v66_v34, 7 }
   0x4   :  { %v541_v17 = vpack.c.bf16 %v280_v4, %v279_v3  ;;  %v265_v18 = vmul.f32 %v20_v14, %v20_v14  ;;  %v266_v19 = vmul.f32 %v21_v15, %v21_v15  ;;  %v39_v20 = vld [vmem:[%s775_s1 + $0xa8] sm:$0xff]  ;;  %v283_v21 = vmul.f32 %v38_v16, %v38_v16  ;;  %v22_v22 = vld [vmem:[%s775_s1 + $0x20] sm:$0xff]  ;;  %v40_v27 = vld [vmem:[%s775_s1 + $0xb0] sm:$0xff] }
   0x5   :  { %v23_v23 = vld [vmem:[%s775_s1 + $0x28] sm:$0xff]  ;;  %v543_v24 = vpack.c.bf16 %v264_v11, %v263_v6  ;;  %v545_v25 = vpack.c.bf16 %v282_v13, %v281_v12  ;;  %v284_v26 = vmul.f32 %v39_v20, %v39_v20  ;;  %v41_v28 = vld [vmem:[%s775_s1 + $0xb8] sm:$0xff]  ;;  %v267_v30 = vmul.f32 %v22_v22, %v22_v22  ;;  %v24_v32 = vld [vmem:[%s775_s1 + $0x30] sm:$0xff] }
   0x6   :  { %542 = vmatprep.subr.bf16.mxu0 %v541_v17  ;;  %v547_v29 = vpack.c.bf16 %v266_v19, %v265_v18  ;;  %v268_v31 = vmul.f32 %v23_v23, %v23_v23  ;;  %v25_v33 = vld [vmem:[%s775_s1 + $0x38] sm:$0xff]  ;;  %v285_v36 = vmul.f32 %v40_v27, %v40_v27  ;;  %v286_v37 = vmul.f32 %v41_v28, %v41_v28  ;;  %v42_v38 = vld [vmem:[%s775_s1 + $0xc0] sm:$0xff]  ;;  %v43_v39 = vld [vmem:[%s775_s1 + $0xc8] sm:$0xff] }
   0x7   :  { %544 = vmatpush3.bf16.msra.mxu0 %v543_v24  ;;  %v549_v35 = vpack.c.bf16 %v284_v26, %v283_v21  ;;  %v50_v40 = vld [vmem:[%s775_s1 + $0x100] sm:$0xff]  ;;  %v51_v41 = vld [vmem:[%s775_s1 + $0x108] sm:$0xff]  ;;  %v269_v42 = vmul.f32 %v24_v32, %v24_v32  ;;  %v270_v43 = vmul.f32 %v25_v33, %v25_v33  ;;  %v52_v48 = vld [vmem:[%s775_s1 + $0x110] sm:$0xff]  ;;  %v287_v52 = vmul.f32 %v42_v38, %v42_v38 }
   0x8   :  { %546 = vmatprep.subr.bf16.mxu0 %v545_v25  ;;  %v295_v44 = vmul.f32 %v50_v40, %v50_v40  ;;  %v551_v45 = vpack.c.bf16 %v268_v31, %v267_v30  ;;  %v26_v46 = vld [vmem:[%s775_s1 + $0x40] sm:$0xff]  ;;  %v296_v47 = vmul.f32 %v51_v41, %v51_v41  ;;  %v53_v49 = vld [vmem:[%s775_s1 + $0x118] sm:$0xff]  ;;  %v553_v51 = vpack.c.bf16 %v286_v37, %v285_v36  ;;  %v27_v54 = vld [vmem:[%s775_s1 + $0x48] sm:$0xff] }
   0x9   :  { %v288_v53 = vmul.f32 %v43_v39, %v43_v39  ;;  %v44_v55 = vld [vmem:[%s775_s1 + $0xd0] sm:$0xff]  ;;  %v45_v56 = vld [vmem:[%s775_s1 + $0xd8] sm:$0xff]  ;;  %v297_v58 = vmul.f32 %v52_v48, %v52_v48  ;;  %v298_v59 = vmul.f32 %v53_v49, %v53_v49  ;;  %v555_v60 = vpack.c.bf16 %v270_v43, %v269_v42  ;;  %v714_v62 = vld [vmem:[%s774_s0] sm:$0x7] }
   0xa   :  { %v574_v57 = vpack.c.bf16 %v296_v47, %v295_v44  ;;  %v271_v61 = vmul.f32 %v26_v46, %v26_v46  ;;  %v54_v63 = vld [vmem:[%s775_s1 + $0x120] sm:$0xff] }
   0xb   :  { %548 = vmatpush3.bf16.msra.mxu0 %v547_v29 }
   0xc   :  { %550 = vmatprep.subr.bf16.mxu0 %v549_v35 }
   0xd   :  { %7 = vsyncpa [#allocation3], 0  ;;  %v272_v0 = vmul.f32 %v27_v54, %v27_v54  ;;  %v28_v1 = vld [vmem:[%s775_s1 + $0x50] sm:$0xff]  ;;  %575 = vmatpush3.bf16.msra.mxu1 %v574_v57  ;;  %v577_v2 = vpack.c.bf16 %v298_v59, %v297_v58  ;;  %v318_v3 = vsub.s32 1, %v700_v50  ;;  %v55_v4 = vld [vmem:[%s775_s1 + $0x128] sm:$0xff]  ;;  %v104_v5 = vadd.s32 296, %v700_v50 }
   0xe   :  { %v557_v6 = vpack.c.bf16 %v288_v53, %v287_v52  ;;  %v289_v7 = vmul.f32 %v44_v55, %v44_v55  ;;  %v290_v8 = vmul.f32 %v45_v56, %v45_v56  ;;  %v29_v10 = vld [vmem:[%s775_s1 + $0x58] sm:$0xff]  ;;  %576 = vmatprep.subr.bf16.mxu1 %v610_v9  ;;  %v46_v11 = vld [vmem:[%s775_s1 + $0xe0] sm:$0xff]  ;;  %v47_v12 = vld [vmem:[%s775_s1 + $0xe8] sm:$0xff]  ;;  %v299_v14 = vmul.f32 %v54_v63, %v54_v63 }
   0xf   :  { %552 = vmatpush3.bf16.msra.mxu0 %v551_v45  ;;  %v319_v13 = vrot.slane %v714_v62, %v318_v3  ;;  %vm202_vm2 = vcmp.lt.s32.totalorder %v104_v5, 300  ;;  %v273_v15 = vmul.f32 %v28_v1, %v28_v1  ;;  %v322_v17 = vsub.s32 2, %v700_v50  ;;  %v30_v24 = vld [vmem:[%s775_s1 + $0x60] sm:$0xff]  ;;  %v31_v25 = vld [vmem:[%s775_s1 + $0x68] sm:$0xff]  ;;  %v48_v26 = vld [vmem:[%s775_s1 + $0xf0] sm:$0xff] }
  0x10   :  { %554 = vmatprep.subr.bf16.mxu0 %v553_v51  ;;  %v250_v16 = vsel %vm202_vm2, %v55_v4, 0.0  ;;  %v559_v18 = vpack.c.bf16 %v272_v0, %v271_v61  ;;  %v274_v19 = vmul.f32 %v29_v10, %v29_v10  ;;  %v561_v21 = vpack.c.bf16 %v290_v8, %v289_v7  ;;  %v49_v27 = vld [vmem:[%s775_s1 + $0xf8] sm:$0xff]  ;;  %v32_v35 = vld [vmem:[%s775_s1 + $0x70] sm:$0xff]  ;;  %v261_v49 = vld [vmem:[#allocation2] sm:$0x1] }
  0x11   :  { %578 = vmatpush3.bf16.msra.mxu1 %v577_v2  ;;  %v300_v20 = vmul.f32 %v250_v16, %v250_v16  ;;  %v291_v22 = vmul.f32 %v46_v11, %v46_v11  ;;  %v292_v23 = vmul.f32 %v47_v12, %v47_v12  ;;  %391 = vmatprep.mubr.f32.mxu0 %v319_v13  ;;  %v33_v36 = vld [vmem:[%s775_s1 + $0x78] sm:$0xff]  ;;  %v314_v41 = vsub.s32 0, %v700_v50  ;;  %s613_s1 = smov [#allocation2]  }
  0x12   :  { %579 = vmatprep.subr.bf16.mxu1 %v610_v9  ;;  %v323_v29 = vrot.slane %v714_v62, %v322_v17  ;;  %v563_v30 = vpack.c.bf16 %v274_v19, %v273_v15  ;;  %v275_v31 = vmul.f32 %v30_v24, %v30_v24  ;;  %v276_v32 = vmul.f32 %v31_v25, %v31_v25  ;;  %s476_s30 = sshll.u32 %s613_s1, 4  ;;  %s477_s30 = int_to_ptr.vmem [resolvable:$true] %s476_s30 }
  0x13   :  { %556 = vmatpush3.bf16.msra.mxu0 %v555_v60  ;;  %v580_v28 = vpack.c.bf16 %v300_v20, %v299_v14  ;;  %v565_v33 = vpack.c.bf16 %v292_v23, %v291_v22  ;;  %v293_v9 = vmul.f32 %v48_v26, %v48_v26  ;;  %v294_v34 = vmul.f32 %v49_v27, %v49_v27  ;;  %s586_s3 = scalar_lea.vmem %s477_s30, 16  ;;  %s590_s4 = scalar_lea.vmem %s477_s30, 32 }
  0x14   :  { %558 = vmatprep.subr.bf16.mxu0 %v557_v6  ;;  %v567_v37 = vpack.c.bf16 %v276_v32, %v275_v31  ;;  %v277_v38 = vmul.f32 %v32_v35, %v32_v35  ;;  %v278_v39 = vmul.f32 %v33_v36, %v33_v36  ;;  %v315_v43 = vrot.slane %v714_v62, %v314_v41  ;;  %p587_p0 = scmp.ne.s32.totalorder %s477_s30, %s586_s3  ;;  %p591_p1 = scmp.lt.s32.totalorder %s477_s30, %s477_s30 }
  0x15   :  { %581 = vmatpush3.bf16.msra.mxu1 %v580_v28  ;;  %v569_v40 = vpack.c.bf16 %v294_v34, %v293_v9  ;;  %p592_p2 = scmp.lt.s32.totalorder %s590_s4, %s586_s3 }
  0x16   :  { %v571_v42 = vpack.c.bf16 %v278_v39, %v277_v38 }
  0x17   :  { %560 = vmatpush3.bf16.msra.mxu0 %v559_v18  ;;  %p593_p3 = por %p592_p2, %p591_p1 }
  0x18   :  { %562 = vmatprep.subr.bf16.mxu0 %v561_v21  ;;  %539 = vmatmul.mubr.f32.vlgmr.msra.gmra.mrb[0].mxu1 %v323_v29 }
  0x19   :  { %p594_p4 = pnand %p593_p3, %p587_p0 }
  0x1b   :  { %564 = vmatpush3.bf16.msra.mxu0 %v563_v30 }
  0x1c   :  { %566 = vmatprep.subr.bf16.mxu0 %v565_v33 }
  0x1f   :  { %568 = vmatpush3.bf16.msra.mxu0 %v567_v37 }
  0x20   :  { %570 = vmatprep.subr.bf16.mxu0 %v569_v40 }
  0x23   :  { %572 = vmatpush3.bf16.msra.mxu0 %v571_v42 }
  0x26   :  { %392 = vmatmul.mubr.f32.vlgmr.msra.gmra.mrb[0].mxu0 %v315_v43 }
  0xeb   :  { %v463_v44 = vpop.f32.mrb[0].mxu1 }
  0xec   :  { %v540_v45 = vpop.f32.mrb[1].mxu1 }
  0xf9   :  { %v516_v46 = vpop.f32.mrb[0].mxu0 }
  0xfa   :  { %v517_v47 = vpop.f32.mrb[1].mxu0 }
  0xfb   :  { %v518_v48 = vadd.f32 %v517_v47, %v516_v46 }
  0xfd   :  { %v464_v51 = vadd.f32 %v518_v48, %v463_v44 }
  0xff   :  { %v467_v52 = vadd.f32 %v464_v51, %v261_v49 }
 0x101   :  { %469 = vst.msk [vmem:[#allocation2] sm:$0x1] %vm16_vm0, %v467_v52 }
 0x102   :  { %597 = shalt.err (!%p594_p4)
}
 0x103   :  { %s598_s7 = scalar_lea.hbm %s776_s2, 16 }
 0x104   :  { %p599_p5 = scmp.ne.s32.totalorder %s776_s2, %s598_s7  ;;  %p602_p6 = scmp.lt.u32.totalorder %s598_s7, %s776_s2 }
 0x106   :  { %p604_p7 = pnand %p602_p6, %p599_p5 }
 0x108   :  { %607 = shalt.err (!%p604_p7)
}
 0x109   :  { %479 = dma.vmem_to_hbm [thread:$0]  %s477_s30, 16, %s776_s2, [#allocation3]  }
 0x10a   :  { %608 = dma.done.wait [#allocation3], 16  }
 0x10b   :  { %609 = vsyncadd [#allocation3], 4294967280 }
 0x10c   :  { %483 = vsyncpa [#allocation3], 1 }

</bundles_post_ra>
